<compile_context>
chip_gen: v7x
topology: tpu7x:2x2x1
jax: 0.10.0
libtpu: 0.0.40
codegen_flags: <defaults>
</compile_context>

<pallas_src>
import functools

import jax
import jax.numpy as jnp
from jax.experimental import pallas as pl
from jax.experimental.pallas import tpu as pltpu


def _round_up(v, m):
    return ((v + m - 1) // m) * m


def _sublane_granule(dtype):
    return {4: 8, 2: 16, 1: 32}.get(jnp.dtype(dtype).itemsize, 8)


def _sumpool_kernel(batch_ref, x_ref, out_ref, acc_ref, *,
                    num_nodes, tile_n, n_steps_per_split, needs_tail_mask):
    # batch_ref: (1, tile_n)         int32  graph id per node (current N tile)
    # x_ref:     (tile_n, tile_f)    float  node-feature tile
    # out_ref:   (1, b_pad, tile_f)  f32    per-(split, F-tile) partial sums
    # acc_ref:   (b_pad, tile_f)     f32    resident accumulator scratch
    n_step = pl.program_id(2)

    @pl.when(n_step == 0)
    def _():
        acc_ref[...] = jnp.zeros_like(acc_ref)

    x = x_ref[...]                                        # (tile_n, tile_f)
    batch = batch_ref[...]                                # (1, tile_n)
    b_pad, t_n = acc_ref.shape[0], x.shape[0]

    if needs_tail_mask:
        # Logical (unclamped) global row index of each row in this tile.  Rows
        # past num_nodes hold whatever was in the buffer (possibly NaN) and the
        # corresponding batch ids are garbage, so zero the feature rows: the
        # select kills NaN/Inf before the matmul (0 * NaN would be NaN).
        split = pl.program_id(0)
        row0 = (split * n_steps_per_split + n_step) * tile_n
        rows = row0 + jax.lax.broadcasted_iota(jnp.int32, (t_n, 1), 0)
        x = jnp.where(rows < num_nodes, x, jnp.zeros_like(x))

    # one-hot assignment matrix: onehot[b, n] = (batch[n] == b)
    # int32 compare + cast; exact in bf16 too.  Negligible VPU filler for the
    # small graph batches of this model (tile_n is capped for large b_pad).
    seg_ids = jax.lax.broadcasted_iota(jnp.int32, (b_pad, t_n), 0)
    onehot = (seg_ids == batch).astype(x.dtype)

    # segment sum == onehot @ x   (runs on the MXU, accumulates in f32)
    acc_ref[...] += jnp.dot(onehot, x, preferred_element_type=jnp.float32)

    @pl.when(n_step == pl.num_programs(2) - 1)
    def _():
        out_ref[...] = acc_ref[...][jnp.newaxis]


def _segment_sum_f32(x, batch, num_graphs, *, tile_n=None, tile_f=None,
                     n_splits=2, target_tile_bytes=8 * 1024 * 1024):
    """Per-graph feature sums via Pallas. Returns (num_graphs, F) float32.

    x is streamed directly from HBM (no padded copy, no tile-multiple padding).
    """
    N, F = x.shape
    num_graphs = int(num_graphs)
    itemsize = jnp.dtype(x.dtype).itemsize
    b_pad = _round_up(max(num_graphs, 1), _sublane_granule(x.dtype))

    # --- feature tile: either all of F, or a multiple-of-128 divisor of F ---
    if tile_f is not None and tile_f != F and (tile_f % 128 != 0 or F % tile_f != 0):
        tile_f = None                     # illegal request -> fall back to auto
    if tile_f is None:
        cap = 1024
        tile_f = F
        if F % 128 == 0 and F > cap:
            for k in range(cap, 127, -128):
                if F % k == 0:
                    tile_f = k
                    break
    tile_f = int(tile_f)
    tile_f_pad = _round_up(tile_f, 128)   # VMEM lane footprint of one x tile

    # --- node tile: multiple of 128 (or all of N); sized for ~8 MiB of x ---
    if tile_n is None:
        rows = max(target_tile_bytes // (tile_f_pad * itemsize), 128)
        # guard one-hot VPU/VMEM cost when the graph batch is large
        rows = min(rows, max(512, (2 * 1024 * 1024) // (4 * b_pad)))
        tile_n = (rows // 128) * 128
    tile_n = int(tile_n)
    if tile_n >= N:
        tile_n = N                        # single full-extent N block
    else:
        tile_n = max(128, (tile_n // 128) * 128)
        if tile_n >= N:
            tile_n = N

    n_blocks = pl.cdiv(N, tile_n)
    n_splits = int(max(1, min(n_splits, n_blocks)))
    nps = pl.cdiv(n_blocks, n_splits)                 # N steps per split
    needs_tail_mask = (n_splits * nps * tile_n) > N   # partial or ghost blocks

    grid = (n_splits, F // tile_f, nps)

    batch2d = batch.astype(jnp.int32).reshape(1, N)

    def x_map(c, f, n):
        return (jnp.minimum(c * nps + n, n_blocks - 1), f)

    def batch_map(c, f, n):
        return (0, jnp.minimum(c * nps + n, n_blocks - 1))

    def out_map(c, f, n):
        return (c, 0, f)

    kernel = functools.partial(
        _sumpool_kernel, num_nodes=N, tile_n=tile_n,
        n_steps_per_split=nps, needs_tail_mask=needs_tail_mask)

    # VMEM budget: double-buffered x / batch / out blocks + f32 accumulator,
    # plus slack for the one-hot / iota temporaries.
    vmem_need = (2 * tile_n * tile_f_pad * itemsize
                 + 2 * _round_up(tile_n, 128) * 4
                 + 2 * b_pad * tile_f_pad * 4
                 + b_pad * tile_f_pad * 4
                 + 3 * b_pad * _round_up(tile_n, 128) * 4)
    vmem_limit = int(min(48 * 1024 * 1024,
                         max(vmem_need + 4 * 1024 * 1024, 8 * 1024 * 1024)))

    parts = pl.pallas_call(
        kernel,
        out_shape=jax.ShapeDtypeStruct((n_splits, b_pad, F), jnp.float32),
        grid_spec=pltpu.PrefetchScalarGridSpec(
            num_scalar_prefetch=0,
            grid=grid,                                   # (split, F tiles, N tiles)
            in_specs=[
                pl.BlockSpec((1, tile_n), batch_map),            # graph ids
                pl.BlockSpec((tile_n, tile_f), x_map),           # features
            ],
            out_specs=pl.BlockSpec((1, b_pad, tile_f), out_map),
            scratch_shapes=[pltpu.VMEM((b_pad, tile_f), jnp.float32)],
        ),
        compiler_params=pltpu.CompilerParams(
            # split + F tiles are independent -> parallel (shards across v7x's
            # two TensorCores); N is the reduction axis -> arbitrary.
            dimension_semantics=("parallel", "parallel", "arbitrary"),
            vmem_limit_bytes=vmem_limit,
        ),
        cost_estimate=pl.CostEstimate(
            flops=2 * b_pad * N * F,
            transcendentals=0,
            bytes_accessed=N * F * itemsize + N * 4 + n_splits * b_pad * F * 4,
        ),
    )(batch2d, x)

    # tiny epilogue: combine per-split partials and drop graph padding
    return jnp.sum(parts, axis=0)[:num_graphs]


def sum_pool(x, batch, num_graphs, **kwargs):
    """Pallas equivalent of global_add_pool(x, batch)."""
    return _segment_sum_f32(x, batch, num_graphs, **kwargs).astype(x.dtype)


def mean_pool(x, batch, num_graphs, **kwargs):
    """Pallas equivalent of global_mean_pool(x, batch) (GAT_He default readout).

    Sums come from the Pallas kernel on the original x (no ones-column concat);
    per-graph counts are a trivial segment_sum over `batch` only (N ints).
    """
    sums = _segment_sum_f32(x, batch, num_graphs, **kwargs)
    counts = jax.ops.segment_sum(jnp.ones((x.shape[0],), jnp.float32),
                                 batch.astype(jnp.int32),
                                 num_segments=int(num_graphs))
    return (sums / jnp.maximum(counts, 1.0)[:, None]).astype(x.dtype)


if __name__ == "__main__":
    key = jax.random.PRNGKey(0)
    k1, k2, k3, k4, k5, k6 = jax.random.split(key, 6)

    # --- small demo consistent with the module (hidden dim 32, 3 graphs) ---
    N, F, B = 20, 32, 3
    x = jax.random.normal(k1, (N, F), dtype=jnp.float32)
    batch = jnp.sort(jax.random.randint(k2, (N,), 0, B, dtype=jnp.int32))

    out_sum = jax.block_until_ready(sum_pool(x, batch, B))
    ref_sum = jax.ops.segment_sum(x, batch, num_segments=B)
    assert out_sum.shape == (B, F)
    assert jnp.allclose(out_sum, ref_sum, atol=1e-5, rtol=1e-5)

    out_mean = jax.block_until_ready(mean_pool(x, batch, B))
    counts = jax.ops.segment_sum(jnp.ones((N,), jnp.float32), batch, num_segments=B)
    ref_mean = ref_sum / jnp.maximum(counts, 1.0)[:, None]
    assert out_mean.shape == (B, F)
    assert jnp.allclose(out_mean, ref_mean, atol=1e-5, rtol=1e-5)

    # --- multi-tile check: N-tail masking, 2-way core split with a clamped
    #     "ghost" block (n_blocks=3, splits=2), and a 2-block F axis ---
    N2, F2, B2 = 1500, 256, 6
    x2 = jax.random.normal(k3, (N2, F2), dtype=jnp.float32)
    batch2 = jnp.sort(jax.random.randint(k4, (N2,), 0, B2, dtype=jnp.int32))
    out2 = jax.block_until_ready(sum_pool(x2, batch2, B2, tile_n=512, tile_f=128))
    ref2 = jax.ops.segment_sum(x2, batch2, num_segments=B2)
    assert out2.shape == (B2, F2)
    assert jnp.allclose(out2, ref2, atol=1e-3, rtol=1e-3)

    # --- bf16 path (halves HBM bytes of the dominant x stream) ---
    N3, F3, B3 = 300, 64, 4
    x3 = jax.random.normal(k5, (N3, F3), dtype=jnp.float32).astype(jnp.bfloat16)
    batch3 = jnp.sort(jax.random.randint(k6, (N3,), 0, B3, dtype=jnp.int32))
    out3 = jax.block_until_ready(mean_pool(x3, batch3, B3))
    ref3_sum = jax.ops.segment_sum(x3.astype(jnp.float32), batch3, num_segments=B3)
    cnt3 = jax.ops.segment_sum(jnp.ones((N3,), jnp.float32), batch3, num_segments=B3)
    ref3 = ref3_sum / jnp.maximum(cnt3, 1.0)[:, None]
    assert out3.shape == (B3, F3)
    assert jnp.allclose(out3.astype(jnp.float32), ref3, atol=2e-2, rtol=2e-2)

    print("KERNEL_OK")
</pallas_src>

<mosaic_0001>
module attributes {stable_mosaic.version = 11 : i64} {
  func.func @_sumpool_kernel(%arg0: i32, %arg1: i32, %arg2: i32, %arg3: memref<1x20xi32, #tpu.memory_space<vmem>>, %arg4: memref<20x32xf32, #tpu.memory_space<vmem>>, %arg5: memref<1x8x32xf32, #tpu.memory_space<vmem>>, %arg6: memref<8x32xf32, #tpu.memory_space<vmem>>) attributes {dimension_semantics = [#tpu.dimension_semantics<parallel>, #tpu.dimension_semantics<parallel>, #tpu.dimension_semantics<arbitrary>], iteration_bounds = array<i64: 1, 1, 1>, scalar_prefetch = 0 : i64, scratch_operands = 1 : i64, tpu.core_type = #tpu.core_type<tc>, window_params = [{transform_indices = @transform_0, window_bounds = array<i64: 1, 20>}, {transform_indices = @transform_1, window_bounds = array<i64: 20, 32>}, {transform_indices = @transform_2, window_bounds = array<i64: 1, 8, 32>}]} {
    %c0_i32 = arith.constant 0 : i32
    %0 = arith.cmpi eq, %arg2, %c0_i32 : i32
    %1 = arith.extui %0 : i1 to i32
    %c0_i32_0 = arith.constant 0 : i32
    %2 = arith.cmpi ne, %1, %c0_i32_0 : i32
    scf.if %2 {
      %cst_10 = arith.constant 0.000000e+00 : f32
      %17 = vector.broadcast %cst_10 : f32 to vector<8x32xf32>
      %c0_11 = arith.constant 0 : index
      %c0_12 = arith.constant 0 : index
      %18 = vector.load %arg6[%c0_11, %c0_12] : memref<8x32xf32, #tpu.memory_space<vmem>>, vector<8x32xf32>
      tpu.vector_store %arg6[%c0_11, %c0_12], %17 {strides = array<i32>} : memref<8x32xf32, #tpu.memory_space<vmem>>, vector<8x32xf32>,
    } else {
    }
    %c0 = arith.constant 0 : index
    %c0_1 = arith.constant 0 : index
    %3 = vector.load %arg4[%c0, %c0_1] : memref<20x32xf32, #tpu.memory_space<vmem>>, vector<20x32xf32>
    %c0_2 = arith.constant 0 : index
    %c0_3 = arith.constant 0 : index
    %4 = vector.load %arg3[%c0_2, %c0_3] : memref<1x20xi32, #tpu.memory_space<vmem>>, vector<1x20xi32>
    %5 = tpu.iota {dimensions = array<i32: 0>} : vector<8x20xi32>
    %6 = vector.broadcast %4 : vector<1x20xi32> to vector<8x20xi32>
    %7 = arith.cmpi eq, %5, %6 : vector<8x20xi32>
    %8 = arith.extui %7 : vector<8x20xi1> to vector<8x20xi32>
    %9 = arith.sitofp %8 : vector<8x20xi32> to vector<8x20xf32>
    %c0_4 = arith.constant 0 : index
    %c0_5 = arith.constant 0 : index
    %10 = vector.load %arg6[%c0_4, %c0_5] : memref<8x32xf32, #tpu.memory_space<vmem>>, vector<8x32xf32>
    %cst = arith.constant dense<0.000000e+00> : vector<8x32xf32>
    %11 = tpu.matmul %9, %3, %cst {dimension_numbers = #tpu.dot_dimension_numbers<[1], [0], [0], [1], [0, 0, 1, 1], [], []>} : vector<8x20xf32>, vector<20x32xf32>, vector<8x32xf32> -> vector<8x32xf32>
    %12 = arith.addf %10, %11 : vector<8x32xf32>
    %c0_6 = arith.constant 0 : index
    %c0_7 = arith.constant 0 : index
    %13 = vector.load %arg6[%c0_6, %c0_7] : memref<8x32xf32, #tpu.memory_space<vmem>>, vector<8x32xf32>
    tpu.vector_store %arg6[%c0_6, %c0_7], %12 {strides = array<i32>} : memref<8x32xf32, #tpu.memory_space<vmem>>, vector<8x32xf32>,
    %c0_i32_8 = arith.constant 0 : i32
    %14 = arith.cmpi eq, %arg2, %c0_i32_8 : i32
    %15 = arith.extui %14 : i1 to i32
    %c0_i32_9 = arith.constant 0 : i32
    %16 = arith.cmpi ne, %15, %c0_i32_9 : i32
    scf.if %16 {
      %c0_10 = arith.constant 0 : index
      %c0_11 = arith.constant 0 : index
      %17 = vector.load %arg6[%c0_10, %c0_11] : memref<8x32xf32, #tpu.memory_space<vmem>>, vector<8x32xf32>
      %18 = vector.shape_cast %17 : vector<8x32xf32> to vector<1x8x32xf32>
      %c0_12 = arith.constant 0 : index
      %c0_13 = arith.constant 0 : index
      %c0_14 = arith.constant 0 : index
      %19 = vector.load %arg5[%c0_12, %c0_13, %c0_14] : memref<1x8x32xf32, #tpu.memory_space<vmem>>, vector<1x8x32xf32>
      tpu.vector_store %arg5[%c0_12, %c0_13, %c0_14], %18 {strides = array<i32>} : memref<1x8x32xf32, #tpu.memory_space<vmem>>, vector<1x8x32xf32>,
    } else {
    }
    return
  }
  func.func @transform_0(%arg0: i32, %arg1: i32, %arg2: i32) -> (i32, i32) {
    %c1_i32 = arith.constant 1 : i32
    %0 = arith.muli %arg0, %c1_i32 : i32
    %1 = arith.addi %0, %arg2 : i32
    %c0_i32 = arith.constant 0 : i32
    %2 = arith.minsi %1, %c0_i32 : i32
    %c0_i32_0 = arith.constant 0 : i32
    %c0_i32_1 = arith.constant 0 : i32
    return %c0_i32_0, %2 : i32, i32
  }
  func.func @transform_1(%arg0: i32, %arg1: i32, %arg2: i32) -> (i32, i32) {
    %c1_i32 = arith.constant 1 : i32
    %0 = arith.muli %arg0, %c1_i32 : i32
    %1 = arith.addi %0, %arg2 : i32
    %c0_i32 = arith.constant 0 : i32
    %2 = arith.minsi %1, %c0_i32 : i32
    %c0_i32_0 = arith.constant 0 : i32
    return %2, %arg1 : i32, i32
  }
  func.func @transform_2(%arg0: i32, %arg1: i32, %arg2: i32) -> (i32, i32, i32) {
    %c0_i32 = arith.constant 0 : i32
    %c0_i32_0 = arith.constant 0 : i32
    return %arg0, %c0_i32, %arg1 : i32, i32, i32
  }
}

</mosaic_0001>

<bundles_post_ra>
// kernel: tpu_custom_call.1
= control target key start
LH: loop header
LB: loop body
LE: loop exit
PB: predicated region body
PF: predicated region fallthrough
CT: control target
= control target key end

     0   :  { %7 = vsyncpa [#allocation4], 0  ;;  %s351_s0 = inlined_call_operand.hbm [shape: s32[1,20], index: 0, kind: input, shape index: {}]   ;;  %s352_s1 = inlined_call_operand.hbm [shape: f32[20,32], index: 1, kind: input, shape index: {}]   ;;  %s353_s2 = inlined_call_operand.hbm [shape: f32[1,8,32], index: 2, kind: output, shape index: {}]  }
   0x1   :  { %8 = vsyncpa [#allocation7], 0 }
   0x2   :  { %9 = vsyncpa [#allocation5], 0  ;;  %s282_s9 = smov [#allocation3]   ;;  %s283_s11 = smov [#allocation6]  }
   0x3   :  { %s21_s10 = sshll.u32 %s282_s9, 4  ;;  %s36_s12 = sshll.u32 %s283_s11, 4  ;;  %s22_s10 = int_to_ptr.vmem [resolvable:$true] %s21_s10  ;;  %s305_s12 = int_to_ptr.vmem [resolvable:$true] %s36_s12 }
   0x4   :  { %s210_s15 = scalar_lea.hbm %s351_s0, 16 }
   0x5   :  { %p211_p0 = scmp.ne.s32.totalorder %s351_s0, %s210_s15  ;;  %p214_p1 = scmp.lt.u32.totalorder %s210_s15, %s351_s0 }
   0x7   :  { %p216_p2 = pnand %p214_p1, %p211_p0 }
   0x9   :  { %219 = shalt.err (!%p216_p2)
}
   0xa   :  { %s220_s20 = scalar_lea.vmem %s22_s10, 16  ;;  %s224_s21 = scalar_lea.vmem %s22_s10, 32 }
   0xb   :  { %p221_p3 = scmp.ne.s32.totalorder %s22_s10, %s220_s20  ;;  %p225_p4 = scmp.lt.s32.totalorder %s22_s10, %s22_s10 }
   0xc   :  { %p226_p5 = scmp.lt.s32.totalorder %s224_s21, %s220_s20 }
   0xe   :  { %p227_p6 = por %p226_p5, %p225_p4 }
  0x10   :  { %p228_p7 = pnand %p227_p6, %p221_p3 }
  0x12   :  { %231 = shalt.err (!%p228_p7)
}
  0x13   :  { %24 = dma.hbm_to_vmem [thread:$0]  %s351_s0, 16, %s22_s10, [#allocation4]  }
  0x14   :  { %s232_s26 = scalar_lea.hbm %s352_s1, 384 }
  0x15   :  { %p233_p8 = scmp.ne.s32.totalorder %s352_s1, %s232_s26  ;;  %p236_p9 = scmp.lt.u32.totalorder %s232_s26, %s352_s1 }
  0x17   :  { %p238_p10 = pnand %p236_p9, %p233_p8 }
  0x19   :  { %241 = shalt.err (!%p238_p10)
}
  0x1a   :  { %s242_s3 = scalar_lea.vmem %s305_s12, 384  ;;  %p247_p12 = scmp.lt.s32.totalorder %s305_s12, %s305_s12 }
  0x1b   :  { %p243_p11 = scmp.ne.s32.totalorder %s305_s12, %s242_s3  ;;  %p248_p13 = scmp.lt.s32.totalorder %s242_s3, %s242_s3 }
  0x1d   :  { %p249_p0 = por %p248_p13, %p247_p12 }
  0x1f   :  { %p250_p1 = pnand %p249_p0, %p243_p11 }
  0x21   :  { %253 = shalt.err (!%p250_p1)
}
  0x22   :  { %s284_s0 = smov 128   ;;  %s285_s4 = smov 8  }
  0x23   :  { %42 = dma.hbm_to_vmem [thread:$0]  %s352_s1, 384, %s305_s12, [#allocation7], %s284_s0, %s284_s0, %s285_s4  }
  0x24   :  { %276 = dma.done.wait [#allocation4], 16  }
  0x25   :  { %277 = vsyncadd [#allocation4], 4294967280 }
  0x26   :  { %278 = dma.done.wait [#allocation7], 384  }
  0x27   :  { %279 = vsyncadd [#allocation7], 4294966912  ;;  %v286_v0 = vmov 0.0|0.0   ;;  %vm287_vm0 = vmmov 0   ;;  %v288_v1 = vmov 0.0   ;;  %v66_v2 = vlaneseq  ;;  %v62_v4 = vld [vmem:[#allocation6] sm:$0xff] }
  0x28   :  { %199 = vmatprep.subr.bf16.mxu0 %v286_v0  ;;  %196 = vmatprep.mubr.msk.f32.mxu0 %vm287_vm0, %v288_v1  ;;  %vm60_vm1 = vcmask 261120   ;;  %v63_v5 = vld [vmem:[#allocation6 + $0x8] sm:$0xff]  ;;  %v182_v7 = vld [vmem:[#allocation3] ss:$0 sm:$0xff]  ;;  %v64_v8 = vld [vmem:[#allocation6 + $0x10] sm:$0xf] }
  0x29   :  { %61 = vst.msk [vmem:[#allocation2] sm:$0xff] %vm60_vm1, %v288_v1  ;;  %v67_v3 = vshrl.u32 %v66_v2, 7  ;;  %v200_v6 = vpack.c.bf16 %v63_v5, %v62_v4  ;;  %vm80_vm3 = vcmask 1043456   ;;  %vm76_vm4 = vcmask 162816   ;;  %s289_s1 = smov [#allocation8]  }
  0x2a   :  { %s168_s7 = sshll.u32 %s289_s1, 4  ;;  %s169_s7 = int_to_ptr.vmem [resolvable:$true] %s168_s7 }
  0x2b   :  { %vm72_vm2 = vcmp.eq.s32.totalorder %v67_v3, %v182_v7  ;;  %201 = vmatpush3.bf16.msra.mxu0 %v200_v6  ;;  %s254_s8 = scalar_lea.vmem %s169_s7, 128  ;;  %p259_p3 = scmp.lt.s32.totalorder %s169_s7, %s169_s7 }
  0x2c   :  { %194 = vmatprep.subr.mxu0 %v288_v1  ;;  %v183_v9 = vsel %vm72_vm2, 1.0, %v288_v1  ;;  %p255_p2 = scmp.ne.s32.totalorder %s169_s7, %s254_s8  ;;  %p260_p4 = scmp.lt.s32.totalorder %s254_s8, %s254_s8 }
  0x2e   :  { %p261_p5 = por %p260_p4, %p259_p3 }
  0x2f   :  { %195 = vmatpush3.msk.msra.mxu0 %vm80_vm3, %v64_v8 }
  0x30   :  { %197 = vmatmul.mubr.msk.f32.vlgmr.msra.gmra.mrb[0].mxu0 %vm76_vm4, %v183_v9  ;;  %v75_v10 = vld [vmem:[#allocation2] sm:$0xff]  ;;  %p262_p6 = pnand %p261_p5, %p255_p2 }
 0x103   :  { %v150_v11 = vpop.f32.mrb[0].mxu0 }
 0x104   :  { %v154_v12 = vadd.f32 %v150_v11, %v75_v10  ;;  %v198_v13 = vpop.f32.mrb[1].mxu0 }
 0x106   :  { %156 = vst.msk [vmem:[#allocation2] sm:$0xff] %vm60_vm1, %v154_v12 }
 0x10d   :  { %v160_v14 = vld [vmem:[#allocation2] sm:$0xff] }
 0x10e   :  { %161 = vst.msk [vmem:[#allocation8] sm:$0xff] %vm60_vm1, %v160_v14 }
 0x10f   :  { %265 = shalt.err (!%p262_p6)
}
 0x110   :  { %s266_s11 = scalar_lea.hbm %s353_s2, 128 }
 0x111   :  { %p267_p7 = scmp.ne.s32.totalorder %s353_s2, %s266_s11  ;;  %p270_p8 = scmp.lt.u32.totalorder %s266_s11, %s353_s2 }
 0x113   :  { %p272_p9 = pnand %p270_p8, %p267_p7 }
 0x115   :  { %275 = shalt.err (!%p272_p9)
}
 0x116   :  { %171 = dma.vmem_to_hbm [thread:$0]  %s169_s7, 128, %s353_s2, [#allocation5]  }
 0x117   :  { %280 = dma.done.wait [#allocation5], 128  }
 0x118   :  { %281 = vsyncadd [#allocation5], 4294967168 }
 0x119   :  { %175 = vsyncpa [#allocation4], 1 }
 0x11a   :  { %176 = vsyncpa [#allocation7], 1 }
 0x11b   :  { %177 = vsyncpa [#allocation5], 1 }

</bundles_post_ra>
